<compile_context>
chip_gen: v7x
topology: tpu7x:2x2x1
jax: 0.10.0
libtpu: 0.0.40
codegen_flags: <defaults>
</compile_context>

<pallas_src>
import functools

import jax
import jax.numpy as jnp
from jax.experimental import pallas as pl
from jax.experimental.pallas import tpu as pltpu


def _custom_loss_kernel(logits_ref, tgt_ref, hid_ref, part_ref, *, n_total):
    # logits_ref: [TN, C] (VMEM)   tgt_ref: [TN, 1] int32 (VMEM)
    # hid_ref:    [TN, H] (VMEM)   part_ref: [1, 2] f32 (SMEM) -> (ce_sum, l1_sum)
    pid = pl.program_id(0)

    logits = logits_ref[...].astype(jnp.float32)            # [TN, C]
    tn, c = logits.shape

    # Rows past the real batch (ragged tail block) contain unspecified data;
    # mask them out of both CE and L1.
    row_ids = pid * tn + jax.lax.broadcasted_iota(jnp.int32, (tn, 1), 0)
    valid = row_ids < n_total                                # [TN, 1] bool

    # Numerically stable log-softmax CE; row_max cancels between lse and picked.
    row_max = jnp.max(logits, axis=-1, keepdims=True)
    shifted = logits - row_max                               # [TN, C]
    lse_shifted = jnp.log(jnp.sum(jnp.exp(shifted), axis=-1, keepdims=True))

    col_ids = jax.lax.broadcasted_iota(jnp.int32, (tn, c), 1)
    picked_shifted = jnp.sum(
        jnp.where(col_ids == tgt_ref[...], shifted, 0.0),
        axis=-1, keepdims=True)                              # [TN, 1]

    ce_rows = jnp.where(valid, lse_shifted - picked_shifted, 0.0)

    # L1 of hidden activity: abs in native dtype, accumulate in f32, tail masked.
    hid = hid_ref[...]
    hid = jnp.where(valid, hid, jnp.zeros((), hid.dtype))
    l1_tile = jnp.sum(jnp.abs(hid).astype(jnp.float32))

    part_ref[0, 0] = jnp.sum(ce_rows)
    part_ref[0, 1] = l1_tile


def _choose_tile(n, c, h, in_itemsize):
    """Rows per grid step, chosen from a VMEM byte budget (lane-padded)."""
    if n < 8:
        return n                                   # block == full batch dim
    pc = -(-c // 128) * 128                        # lane padding of minor dims
    ph = -(-h // 128) * 128
    # Per-row VMEM: logits + hidden tiles (native dtype) + lane-padded int32
    # target column, per in-flight buffer.
    in_row = (pc + ph) * in_itemsize + 128 * 4
    # f32 compute temporaries (logits f32 / shifted / exp / select; abs / mask).
    tmp_row = 4 * (4 * pc + 2 * ph)
    budget = 24 << 20                              # 2x dbl-buffered inputs + temps
    tn = budget // (2 * in_row + tmp_row)
    tn = max(8, (tn // 8) * 8)
    return min(tn, (n // 8) * 8)


def custom_loss(output, target, hidden_activity, l1_lambda):
    """output: [N, C] float logits; target: [N] int class indices in [0, C);
    hidden_activity: [N, H] float. Returns scalar f32 loss."""
    n, c = output.shape
    h = hidden_activity.shape[1]

    out_isz = jnp.dtype(output.dtype).itemsize
    hid_isz = jnp.dtype(hidden_activity.dtype).itemsize
    tn = _choose_tile(n, c, h, max(out_isz, hid_isz))
    n_tiles = pl.cdiv(n, tn)

    tgt = target.astype(jnp.int32).reshape(n, 1)

    kernel = functools.partial(_custom_loss_kernel, n_total=n)

    cost = pl.CostEstimate(
        flops=5 * n * c + 2 * n * h,
        transcendentals=n * c + n,
        bytes_accessed=n * c * out_isz + n * h * hid_isz + n * 4 + n_tiles * 8,
    )

    partials = pl.pallas_call(
        kernel,
        out_shape=jax.ShapeDtypeStruct((n_tiles, 2), jnp.float32),
        grid=(n_tiles,),
        in_specs=[
            pl.BlockSpec((tn, c), lambda i: (i, 0)),   # logits tile
            pl.BlockSpec((tn, 1), lambda i: (i, 0)),   # target tile
            pl.BlockSpec((tn, h), lambda i: (i, 0)),   # hidden tile
        ],
        out_specs=pl.BlockSpec((1, 2), lambda i: (i, 0),
                               memory_space=pltpu.SMEM),
        compiler_params=pltpu.CompilerParams(
            dimension_semantics=("parallel",),
            vmem_limit_bytes=32 << 20,
        ),
        cost_estimate=cost,
    )(output, tgt, hidden_activity)

    # Tiny final reduction (tree sum) + scale in plain JAX.
    ce_sum = jnp.sum(partials[:, 0])
    l1_sum = jnp.sum(partials[:, 1])
    return ce_sum / jnp.float32(n) + jnp.float32(l1_lambda) * l1_sum


def _reference_loss(output, target, hidden_activity, l1_lambda):
    logits = output.astype(jnp.float32)
    logz = jax.nn.logsumexp(logits, axis=-1)
    picked = jnp.take_along_axis(logits, target[:, None], axis=-1)[:, 0]
    ce = jnp.mean(logz - picked)
    l1 = jnp.sum(jnp.abs(hidden_activity.astype(jnp.float32)))
    return ce + l1_lambda * l1


if __name__ == "__main__":
    key = jax.random.PRNGKey(0)
    k1, k2, k3 = jax.random.split(key, 3)

    N, C, H = 8, 10, 32
    l1_lambda = 0.01

    output = jax.random.normal(k1, (N, C), dtype=jnp.float32)
    target = jax.random.randint(k2, (N,), 0, C, dtype=jnp.int32)
    hidden_activity = jax.random.normal(k3, (N, H), dtype=jnp.float32)

    loss = custom_loss(output, target, hidden_activity, l1_lambda)
    loss = jax.block_until_ready(loss)

    ref = _reference_loss(output, target, hidden_activity, l1_lambda)
    assert jnp.allclose(loss, ref, rtol=1e-5, atol=1e-5), (loss, ref)

    print("KERNEL_OK")
</pallas_src>

<mosaic_0001>
module attributes {stable_mosaic.version = 11 : i64} {
  func.func @_custom_loss_kernel(%arg0: i32, %arg1: memref<8x10xf32, #tpu.memory_space<vmem>>, %arg2: memref<8x1xi32, #tpu.memory_space<vmem>>, %arg3: memref<8x32xf32, #tpu.memory_space<vmem>>, %arg4: memref<1x2xf32, #tpu.memory_space<smem>>) attributes {dimension_semantics = [#tpu.dimension_semantics<parallel>], iteration_bounds = array<i64: 1>, scalar_prefetch = 0 : i64, scratch_operands = 0 : i64, tpu.core_type = #tpu.core_type<tc>, window_params = [{transform_indices = @transform_0, window_bounds = array<i64: 8, 10>}, {transform_indices = @transform_1, window_bounds = array<i64: 8, 1>}, {transform_indices = @transform_2, window_bounds = array<i64: 8, 32>}, {transform_indices = @transform_3, window_bounds = array<i64: 1, 2>}]} {
    %c0 = arith.constant 0 : index
    %c0_0 = arith.constant 0 : index
    %0 = vector.load %arg1[%c0, %c0_0] : memref<8x10xf32, #tpu.memory_space<vmem>>, vector<8x10xf32>
    %c8_i32 = arith.constant 8 : i32
    %1 = arith.muli %arg0, %c8_i32 : i32
    %2 = tpu.iota {dimensions = array<i32: 0>} : vector<8x1xi32>
    %3 = vector.broadcast %1 : i32 to vector<8x1xi32>
    %4 = arith.addi %3, %2 : vector<8x1xi32>
    %c8_i32_1 = arith.constant 8 : i32
    %5 = vector.broadcast %c8_i32_1 : i32 to vector<8x1xi32>
    %6 = arith.cmpi slt, %4, %5 : vector<8x1xi32>
    %cst = arith.constant dense<0xFF800000> : vector<8xf32>
    %7 = vector.multi_reduction <maximumf>, %0, %cst [1] : vector<8x10xf32> to vector<8xf32>
    %8 = vector.shape_cast %7 : vector<8xf32> to vector<8x1xf32>
    %9 = vector.broadcast %8 : vector<8x1xf32> to vector<8x10xf32>
    %10 = arith.subf %0, %9 : vector<8x10xf32>
    %11 = math.exp %10 : vector<8x10xf32>
    %cst_2 = arith.constant dense<0.000000e+00> : vector<8xf32>
    %12 = vector.multi_reduction <add>, %11, %cst_2 [1] : vector<8x10xf32> to vector<8xf32>
    %13 = vector.shape_cast %12 : vector<8xf32> to vector<8x1xf32>
    %14 = math.log %13 : vector<8x1xf32>
    %15 = tpu.iota {dimensions = array<i32: 1>} : vector<8x10xi32>
    %c0_3 = arith.constant 0 : index
    %c0_4 = arith.constant 0 : index
    %16 = vector.load %arg2[%c0_3, %c0_4] : memref<8x1xi32, #tpu.memory_space<vmem>>, vector<8x1xi32>
    %17 = vector.broadcast %16 : vector<8x1xi32> to vector<8x10xi32>
    %18 = arith.cmpi eq, %15, %17 : vector<8x10xi32>
    %cst_5 = arith.constant 0.000000e+00 : f32
    %19 = vector.broadcast %cst_5 : f32 to vector<8x10xf32>
    %20 = arith.select %18, %10, %19 : vector<8x10xi1>, vector<8x10xf32>
    %cst_6 = arith.constant dense<0.000000e+00> : vector<8xf32>
    %21 = vector.multi_reduction <add>, %20, %cst_6 [1] : vector<8x10xf32> to vector<8xf32>
    %22 = vector.shape_cast %21 : vector<8xf32> to vector<8x1xf32>
    %23 = arith.subf %14, %22 : vector<8x1xf32>
    %cst_7 = arith.constant 0.000000e+00 : f32
    %24 = vector.broadcast %cst_7 : f32 to vector<8x1xf32>
    %25 = arith.select %6, %23, %24 : vector<8x1xi1>, vector<8x1xf32>
    %c0_8 = arith.constant 0 : index
    %c0_9 = arith.constant 0 : index
    %26 = vector.load %arg3[%c0_8, %c0_9] : memref<8x32xf32, #tpu.memory_space<vmem>>, vector<8x32xf32>
    %cst_10 = arith.constant 0.000000e+00 : f32
    %27 = vector.shape_cast %6 : vector<8x1xi1> to vector<8x1xi1>
    %28 = vector.broadcast %27 : vector<8x1xi1> to vector<8x32xi1>
    %29 = vector.broadcast %cst_10 : f32 to vector<8x32xf32>
    %30 = arith.select %28, %26, %29 : vector<8x32xi1>, vector<8x32xf32>
    %31 = math.absf %30 : vector<8x32xf32>
    %32 = vector.shape_cast %31 : vector<8x32xf32> to vector<1x8x32xf32>
    %cst_11 = arith.constant dense<0.000000e+00> : vector<1xf32>
    %33 = vector.multi_reduction <add>, %32, %cst_11 [1, 2] : vector<1x8x32xf32> to vector<1xf32>
    %34 = vector.shape_cast %33 : vector<1xf32> to vector<1x1x1xf32>
    %35 = vector.extract %34[0, 0, 0] : f32 from vector<1x1x1xf32>
    %36 = vector.shape_cast %25 : vector<8x1xf32> to vector<1x8x1xf32>
    %cst_12 = arith.constant dense<0.000000e+00> : vector<1xf32>
    %37 = vector.multi_reduction <add>, %36, %cst_12 [1, 2] : vector<1x8x1xf32> to vector<1xf32>
    %38 = vector.shape_cast %37 : vector<1xf32> to vector<1x1x1xf32>
    %39 = vector.extract %38[0, 0, 0] : f32 from vector<1x1x1xf32>
    %c0_13 = arith.constant 0 : index
    %c0_14 = arith.constant 0 : index
    %40 = memref.load %arg4[%c0_13, %c0_14] : memref<1x2xf32, #tpu.memory_space<smem>>
    memref.store %39, %arg4[%c0_13, %c0_14] : memref<1x2xf32, #tpu.memory_space<smem>>
    %c0_15 = arith.constant 0 : index
    %c1 = arith.constant 1 : index
    %41 = memref.load %arg4[%c0_15, %c1] : memref<1x2xf32, #tpu.memory_space<smem>>
    memref.store %35, %arg4[%c0_15, %c1] : memref<1x2xf32, #tpu.memory_space<smem>>
    return
  }
  func.func @transform_0(%arg0: i32) -> (i32, i32) {
    %c0_i32 = arith.constant 0 : i32
    %c0_i32_0 = arith.constant 0 : i32
    return %arg0, %c0_i32 : i32, i32
  }
  func.func @transform_1(%arg0: i32) -> (i32, i32) {
    %c0_i32 = arith.constant 0 : i32
    %c0_i32_0 = arith.constant 0 : i32
    return %arg0, %c0_i32 : i32, i32
  }
  func.func @transform_2(%arg0: i32) -> (i32, i32) {
    %c0_i32 = arith.constant 0 : i32
    %c0_i32_0 = arith.constant 0 : i32
    return %arg0, %c0_i32 : i32, i32
  }
  func.func @transform_3(%arg0: i32) -> (i32, i32) {
    %c0_i32 = arith.constant 0 : i32
    %c0_i32_0 = arith.constant 0 : i32
    return %arg0, %c0_i32 : i32, i32
  }
}

</mosaic_0001>

<bundles_post_ra>
// kernel: tpu_custom_call.1
= control target key start
LH: loop header
LB: loop body
LE: loop exit
PB: predicated region body
PF: predicated region fallthrough
CT: control target
= control target key end

     0   :  { %vm22_vm0 = vcmask 80896   ;;  %s160_s0 = inlined_call_operand.vmem [shape: f32[8,10], index: 0, kind: input, shape index: {}]   ;;  %s161_s1 = inlined_call_operand.vmem [shape: s32[8,1], index: 1, kind: input, shape index: {}]   ;;  %s162_s2 = inlined_call_operand.vmem [shape: f32[8,32], index: 2, kind: input, shape index: {}]   ;;  %s163_s3 = inlined_call_operand.hbm [shape: f32[1,2], index: 3, kind: output, shape index: {}]  }
   0x1   :  { %v15_v0 = vld [vmem:[%s160_s0] sm:$0xff] }
   0x2   :  { %8 = vsyncpa [#allocation3], 0  ;;  %v23_v1 = vsel %vm22_vm0, %v15_v0, -inf  ;;  %v114_v2 = vmov 0   ;;  %v36_v3 = vld [vmem:[%s161_s1] sm:$0xff]  ;;  %v34_v7 = vlaneseq  ;;  %vm52_vm2 = vcmask 261120  }
   0x3   :  { %97 = vset.pattern.permute.xlu0 %v114_v2  ;;  %v47_v14 = vld [vmem:[%s162_s2] sm:$0xff]  ;;  %vm63_vm3 = vcmask 7168   ;;  %s102_s19 = scalar_lea.hbm %s163_s3, 16 }
   0x4   :  { %24 = vmax.xlane.f32.xlu0 %v23_v1  ;;  %v35_v8 = vand.u32 127, %v34_v7  ;;  %v51_v15 = vand.u32 2147483647, %v47_v14  ;;  %p103_p0 = scmp.ne.s32.totalorder %s163_s3, %s102_s19  ;;  %p106_p1 = scmp.lt.u32.totalorder %s102_s19, %s163_s3 }
   0x6   :  { %v53_v16 = vsel %vm52_vm2, %v51_v15, 0.0  ;;  %p108_p2 = pnand %p106_p1, %p103_p0 }
  0x1a   :  { %38 = vperm.xlu0 %97, %v36_v3  }
  0x91   :  { %v25_v4 = vpop.xlane.xlu0 %24 }
  0x92   :  { %v26_v5 = vsub.f32 %v15_v0, %v25_v4 }
  0x94   :  { %v27_v6 = vmul.f32 1.442695, %v26_v5 }
  0x96   :  { %98 = vpow2.f32 %v27_v6 }
  0x99   :  { %v39_v9 = vpop.permute.xlu0 %38 }
  0x9a   :  { %vm40_vm1 = vcmp.eq.s32.totalorder %v35_v8, %v39_v9 }
  0x9b   :  { %v41_v12 = vsel %vm40_vm1, %v26_v5, 0.0 }
  0x9c   :  { %v42_v13 = vsel %vm22_vm0, %v41_v12, 0.0 }
  0xa0   :  { %v99_v10 = vpop.eup %98 }
  0xa1   :  { %v29_v11 = vsel %vm22_vm0, %v99_v10, 0.0 }
  0xa2   :  { %30 = vadd.xlane.f32.xlu1 %v29_v11 }
  0xa6   :  { %43 = vadd.xlane.f32.xlu1 %v42_v13 }
  0xaa   :  { %54 = vadd.xlane.f32.xlu1 %v53_v16 }
 0x12f   :  { %v31_v17 = vpop.xlane.xlu1 %30 }
 0x130   :  { %100 = vlog2.f32 %v31_v17 }
 0x133   :  { %v44_v20 = vpop.xlane.xlu1 %43 }
 0x137   :  { %v55_v23 = vpop.xlane.xlu1 %54 }
 0x138   :  { %v56_v24 = vrot.slane %v55_v23, 4 }
 0x13a   :  { %v101_v18 = vpop.eup %100  ;;  %v57_v25 = vadd.f32 %v56_v24, %v55_v23 }
 0x13b   :  { %v33_v19 = vmul.f32 0.6931472, %v101_v18 }
 0x13c   :  { %v58_v26 = vrot.slane %v57_v25, 2 }
 0x13d   :  { %v45_v21 = vsub.f32 %v33_v19, %v44_v20 }
 0x13e   :  { %v59_v27 = vadd.f32 %v58_v26, %v57_v25 }
 0x13f   :  { %v64_v22 = vsel %vm63_vm3, %v45_v21, 0.0 }
 0x140   :  { %65 = vadd.xlane.f32.xlu1 %v64_v22  ;;  %v60_v28 = vrot.slane %v59_v27, 1 }
 0x142   :  { %v61_v29 = vadd.f32 %v60_v28, %v59_v27 }
 0x144   :  { %91 = vpush %v61_v29 }
 0x175   :  { %s92_s1 = spop %91 }
 0x176   :  { %77 = sst [smem:[#allocation2 + $0x1]] %s92_s1 }
 0x1cd   :  { %v66_v30 = vpop.xlane.xlu1 %65 }
 0x1ce   :  { %v67_v31 = vrot.slane %v66_v30, 4 }
 0x1d0   :  { %v68_v32 = vadd.f32 %v67_v31, %v66_v30 }
 0x1d2   :  { %v69_v33 = vrot.slane %v68_v32, 2 }
 0x1d4   :  { %v70_v34 = vadd.f32 %v69_v33, %v68_v32 }
 0x1d6   :  { %v71_v35 = vrot.slane %v70_v34, 1 }
 0x1d8   :  { %v72_v36 = vadd.f32 %v71_v35, %v70_v34 }
 0x1da   :  { %93 = vpush %v72_v36 }
 0x20b   :  { %s94_s2 = spop %93 }
 0x20c   :  { %75 = sst [smem:[#allocation2]] %s94_s2 }
 0x20d   :  { %111 = shalt.err (!%p108_p2)
}
 0x20e   :  { %s115_s24 = smov [#allocation2]  }
 0x20f   :  { %85 = dma.smem_to_hbm %s115_s24, 16, %s163_s3, [#allocation3]  }
 0x210   :  { %112 = dma.done.wait [#allocation3], 16  }
 0x211   :  { %113 = vsyncadd [#allocation3], 4294967280 }
 0x212   :  { %89 = sfence }
 0x213   :  { %90 = vsyncpa [#allocation3], 1 }

</bundles_post_ra>
